<compile_context>
chip_gen: v5e
topology: v5e:2x2
jax: 0.10.0
libtpu: 0.0.40
codegen_flags: <defaults>
</compile_context>

<pallas_src>
import functools

import numpy as np
import jax
import jax.numpy as jnp
from jax.experimental import pallas as pl
from jax.experimental.pallas import tpu as pltpu


# --------------------------------------------------------------------------
# Host-side (numpy) constant construction -- input independent geometry.
# --------------------------------------------------------------------------
def _band_matrices(out_size, in_size, k, stride, pad):
    """1-D window band matrices (used by the generic Path B).

    band[o, i]  = 1 if input index i lies in window o (zero padding outside)
    wband[o, i] = normalized in-window coordinate 2*(i-start)/(k-1) - 1 inside
    """
    o = np.arange(out_size)[:, None]
    i = np.arange(in_size)[None, :]
    start = o * stride - pad
    inside = (i >= start) & (i < start + k)
    band = inside.astype(np.float32)
    wband = ((2.0 * (i - start) / max(k - 1, 1e-8) - 1.0) * band).astype(np.float32)
    return band, wband


def _pool_matrix_2d(h, w, ho, wo, ky, kx, sy, sx, py, px):
    """Full 2-D pooling matrix for the lane-dense Path A.

    Returns P of shape (h*w, 3*ho*wo) with column blocks [den | x-num | y-num]:
        den[i, o]  = 1 if flat input position i is inside output window o
        x-num[i,o] = normalized in-window x coordinate (if inside, else 0)
        y-num[i,o] = normalized in-window y coordinate (if inside, else 0)
    """
    y = np.arange(h)[:, None]
    x = np.arange(w)[:, None]
    ys = (np.arange(ho) * sy - py)[None, :]
    xs = (np.arange(wo) * sx - px)[None, :]
    in_y = ((y >= ys) & (y < ys + ky)).astype(np.float32)            # (h, ho)
    in_x = ((x >= xs) & (x < xs + kx)).astype(np.float32)            # (w, wo)
    wy = (2.0 * (y - ys) / max(ky - 1, 1e-8) - 1.0) * in_y           # (h, ho)
    wx = (2.0 * (x - xs) / max(kx - 1, 1e-8) - 1.0) * in_x           # (w, wo)
    den = (in_y[:, None, :, None] * in_x[None, :, None, :]).reshape(h * w, ho * wo)
    pmx = (in_y[:, None, :, None] * wx[None, :, None, :]).reshape(h * w, ho * wo)
    pmy = (wy[:, None, :, None] * in_x[None, :, None, :]).reshape(h * w, ho * wo)
    return np.concatenate([den, pmx, pmy], axis=1).astype(np.float32)


def _grid_global_pooled(h, w, ky, kx, stride, padding):
    """Equivalent of F.conv2d(grid_global, center_kernel, stride, padding)."""
    sy, sx = stride
    py, px = padding
    ho = (h + 2 * py - ky) // sy + 1
    wo = (w + 2 * px - kx) // sx + 1
    ys, xs = np.meshgrid(np.arange(h, dtype=np.float64),
                         np.arange(w, dtype=np.float64), indexing="ij")
    gx = np.pad(xs, ((py, py), (px, px)))
    gy = np.pad(ys, ((py, py), (px, px)))
    if ky % 2 != 0:
        h1, h2 = ky // 2, ky // 2 + 1
    else:
        h1, h2 = ky // 2 - 1, ky // 2 + 1
    if kx % 2 != 0:
        w1, w2 = kx // 2, kx // 2 + 1
    else:
        w1, w2 = kx // 2 - 1, kx // 2 + 1
    area = float((h2 - h1) * (w2 - w1))
    out = np.zeros((2, ho, wo), np.float64)
    for oy in range(ho):
        for ox in range(wo):
            y0, x0 = oy * sy, ox * sx
            out[0, oy, ox] = gx[y0 + h1:y0 + h2, x0 + w1:x0 + w2].sum() / area
            out[1, oy, ox] = gy[y0 + h1:y0 + h2, x0 + w1:x0 + w2].sum() / area
    return out.astype(np.float32)


def _pick_plane_batch(bc, per_plane_bytes, budget_bytes=12 << 20):
    """Planes per grid step: multiple of 8 (sublane tile) unless bc is smaller,
    capped by a VMEM budget, and small enough to give >= 2 grid steps whenever
    bc > 8 (so v7x's two TensorCores both get work on the 'parallel' axis)."""
    if bc <= 8:
        return bc                      # block second-minor == full dim: always legal
    cap = budget_bytes // max(per_plane_bytes, 1)
    cap = max(8, min(512, (cap // 8) * 8))
    half = (-(-bc // 2) // 8) * 8      # ceil(bc/2) rounded down to a multiple of 8
    return min(cap, max(8, half))


def _vmem_limit(const_bytes, block_bytes):
    """Honest, headroom-preserving VMEM limit: never more than 48 MiB (v7x)."""
    need = 2 * (2 * const_bytes + block_bytes)
    return int(min(48 << 20, max(32 << 20, need)))


# --------------------------------------------------------------------------
# Path A kernel: lane-dense flat planes, one pooling matrix, two MXU matmuls.
# --------------------------------------------------------------------------
def _csa_kernel_dense(x_ref, p_ref, aff_ref, coords_ref, val_ref, *,
                      hwo, inv_t, eps):
    f32 = jnp.float32
    xb = x_ref[...].astype(f32)                              # (tb, h*w) lane-dense
    x_max = jnp.max(xb, axis=-1, keepdims=True)              # per-plane max (XLU)
    e = jnp.exp((xb - x_max) * inv_t)                        # EUP

    # One pooling-matrix matmul for den / x-num / y-num, one for the val
    # numerator (static ref slice of the resident constant -- no extra DMA).
    r = jnp.dot(e, p_ref[...], preferred_element_type=f32)               # (tb, 3*hwo)
    rv = jnp.dot(e * xb, p_ref[:, :hwo], preferred_element_type=f32)     # (tb, hwo)

    den = r[:, :hwo] + eps
    inv_den = pl.reciprocal(den, approx=True)                # EUP; coords only
    cxy = jnp.concatenate([r[:, hwo:2 * hwo] * inv_den,
                           r[:, 2 * hwo:] * inv_den], axis=-1)           # (tb, 2*hwo)
    # Affine row 0 = scale, row 1 = (pooled center grid)*scale + offset;
    # folds center-grid add and coordinate normalization into one FMA.
    coords_ref[...] = (cxy * aff_ref[0:1, :] + aff_ref[1:2, :]).astype(coords_ref.dtype)
    val_ref[...] = (rv / den).astype(val_ref.dtype)          # exact divide for val


def _run_dense(x, b, c, h, w, ho, wo, ky, kx, sy, sx, py, px,
               inv_t, eps, scale_x, scale_y, off, gg, out_dtype):
    bc, hw, hwo = b * c, h * w, ho * wo
    pmat = _pool_matrix_2d(h, w, ho, wo, ky, kx, sy, sx, py, px)      # (hw, 3*hwo)
    aff = np.stack([
        np.concatenate([np.full(hwo, scale_x, np.float32),
                        np.full(hwo, scale_y, np.float32)]),
        np.concatenate([gg[0].ravel() * scale_x + off,
                        gg[1].ravel() * scale_y + off]).astype(np.float32),
    ]).astype(np.float32)                                             # (2, 2*hwo)

    x2 = x.reshape(bc, hw)                                            # free reshape
    isz = x.dtype.itemsize
    per_plane = 2 * hw * isz + 2 * 3 * hwo * isz + 4 * (3 * hw + 8 * hwo)
    tb = _pick_plane_batch(bc, per_plane)
    gsteps = pl.cdiv(bc, tb)
    const_bytes = pmat.nbytes + aff.nbytes

    cost = pl.CostEstimate(
        flops=int(2 * gsteps * tb * hw * 4 * hwo + 10 * gsteps * tb * hw),
        transcendentals=int(gsteps * tb * hw),
        bytes_accessed=int(isz * bc * (hw + 3 * hwo) + const_bytes))

    kernel = functools.partial(_csa_kernel_dense, hwo=hwo,
                               inv_t=inv_t, eps=float(eps))
    coords, vals = pl.pallas_call(
        kernel,
        out_shape=(jax.ShapeDtypeStruct((bc, 2 * hwo), out_dtype),
                   jax.ShapeDtypeStruct((bc, hwo), out_dtype)),
        grid_spec=pltpu.PrefetchScalarGridSpec(
            num_scalar_prefetch=0,
            grid=(gsteps,),
            in_specs=[
                pl.BlockSpec((tb, hw), lambda i: (i, 0)),             # flat planes
                pl.BlockSpec((hw, 3 * hwo), lambda i: (0, 0)),        # pooling matrix
                pl.BlockSpec((2, 2 * hwo), lambda i: (0, 0)),         # affine consts
            ],
            out_specs=[
                pl.BlockSpec((tb, 2 * hwo), lambda i: (i, 0)),        # coords slab
                pl.BlockSpec((tb, hwo), lambda i: (i, 0)),            # vals slab
            ],
        ),
        compiler_params=pltpu.CompilerParams(
            dimension_semantics=("parallel",),
            vmem_limit_bytes=_vmem_limit(const_bytes, tb * per_plane)),
        cost_estimate=cost,
    )(x2, jnp.asarray(pmat), jnp.asarray(aff))

    # Per plane the coords slab is [cx(ho*wo) | cy(ho*wo)] -> (2, ho, wo) row-major:
    # the reshapes below are contiguous (free), no transpose pass needed.
    return coords.reshape(b, c, 2, ho, wo), vals.reshape(b, c, ho, wo)


# --------------------------------------------------------------------------
# Path B kernel: generic separable band-matrix fallback (large heatmaps).
# --------------------------------------------------------------------------
def _csa_kernel_band(x_ref, l_ref, r_ref, g_ref, coords_ref, val_ref, *,
                     h_valid, ho, wo, inv_t, eps, scale_x, scale_y):
    f32 = jnp.float32
    xb = x_ref[...].astype(f32)                              # (tb, h8, w)
    tb, h8, w = xb.shape

    xv = xb if h_valid == h8 else xb[:, :h_valid, :]         # exclude padded rows
    x_max = jnp.max(xv, axis=(1, 2), keepdims=True)          # (tb, 1, 1)
    e = jnp.exp((xb - x_max) * inv_t)
    ex = e * xb

    rmat = r_ref[...]                                        # (w, 2*wo) [B^T | Bx^T]
    # Column pooling: two fused (tb*h8, w) matmuls (h8 % 8 == 0 by construction).
    ce_e = jnp.dot(e.reshape(tb * h8, w), rmat,
                   preferred_element_type=f32).reshape(tb, h8, 2 * wo)
    ce_v = jnp.dot(ex.reshape(tb * h8, w), rmat[:, :wo],
                   preferred_element_type=f32).reshape(tb, h8, wo)
    ce = jnp.concatenate([ce_e, ce_v], axis=-1)              # (tb, h8, 3*wo)

    # Row pooling: single batched einsum against [A ; Ay].
    lb = jnp.broadcast_to(l_ref[...], (tb, 2 * ho, h8))
    rp = jnp.einsum('boh,bhn->bon', lb, ce,
                    preferred_element_type=f32)              # (tb, 2*ho, 3*wo)

    den = rp[:, :ho, :wo] + eps
    inv_den = pl.reciprocal(den, approx=True)
    cx = rp[:, :ho, wo:2 * wo] * inv_den * scale_x + g_ref[0]
    cy = rp[:, ho:, :wo] * inv_den * scale_y + g_ref[1]
    val = rp[:, :ho, 2 * wo:] / den                          # exact divide

    coords_ref[:, 0, :, :] = cx.astype(coords_ref.dtype)
    coords_ref[:, 1, :, :] = cy.astype(coords_ref.dtype)
    val_ref[...] = val.astype(val_ref.dtype)


def _run_band(x, b, c, h, w, ho, wo, ky, kx, sy, sx, py, px,
              inv_t, eps, scale_x, scale_y, off, gg, out_dtype):
    bc = b * c
    h8 = -(-h // 8) * 8
    a_band, ay_band = _band_matrices(ho, h, ky, sy, py)              # (ho, h)
    bcol, bxcol = _band_matrices(wo, w, kx, sx, px)                  # (wo, w)
    lmat = np.zeros((2 * ho, h8), np.float32)                        # [A ; Ay], zero pad cols
    lmat[:ho, :h] = a_band
    lmat[ho:, :h] = ay_band
    rmat = np.concatenate([bcol.T, bxcol.T], axis=1).astype(np.float32)   # (w, 2*wo)
    gg_t = np.stack([gg[0] * scale_x + off,
                     gg[1] * scale_y + off]).astype(np.float32)      # (2, ho, wo)

    x3 = x.reshape(bc, h, w)
    if h8 != h:
        # Rare unaligned-H case (review-endorsed): zero rows never contribute
        # because the corresponding lmat columns are zero.
        x3 = jnp.pad(x3, ((0, 0), (0, h8 - h), (0, 0)))

    isz = x.dtype.itemsize
    per_plane = (2 * h8 * w * isz + 2 * 3 * ho * wo * isz
                 + 4 * (3 * h8 * w + 4 * h8 * 3 * wo + 8 * ho * wo))
    tb = _pick_plane_batch(bc, per_plane)
    gsteps = pl.cdiv(bc, tb)
    const_bytes = lmat.nbytes + rmat.nbytes + gg_t.nbytes

    cost = pl.CostEstimate(
        flops=int(2 * gsteps * tb * (3 * h8 * w * wo + 6 * ho * h8 * wo)
                  + 10 * gsteps * tb * h8 * w),
        transcendentals=int(gsteps * tb * h8 * w),
        bytes_accessed=int(isz * bc * (h8 * w + 3 * ho * wo) + const_bytes))

    kernel = functools.partial(
        _csa_kernel_band, h_valid=h, ho=ho, wo=wo, inv_t=inv_t, eps=float(eps),
        scale_x=scale_x, scale_y=scale_y)

    coords, vals = pl.pallas_call(
        kernel,
        out_shape=(jax.ShapeDtypeStruct((bc, 2, ho, wo), out_dtype),
                   jax.ShapeDtypeStruct((bc, ho, wo), out_dtype)),
        grid_spec=pltpu.PrefetchScalarGridSpec(
            num_scalar_prefetch=0,
            grid=(gsteps,),
            in_specs=[
                pl.BlockSpec((tb, h8, w), lambda i: (i, 0, 0)),       # heatmap planes
                pl.BlockSpec((2 * ho, h8), lambda i: (0, 0)),         # [A ; Ay]
                pl.BlockSpec((w, 2 * wo), lambda i: (0, 0)),          # [B^T | Bx^T]
                pl.BlockSpec((2, ho, wo), lambda i: (0, 0, 0)),       # transformed grid
            ],
            out_specs=[
                pl.BlockSpec((tb, 2, ho, wo), lambda i: (i, 0, 0, 0)),
                pl.BlockSpec((tb, ho, wo), lambda i: (i, 0, 0)),
            ],
        ),
        compiler_params=pltpu.CompilerParams(
            dimension_semantics=("parallel",),
            vmem_limit_bytes=_vmem_limit(const_bytes, tb * per_plane)),
        cost_estimate=cost,
    )(x3, jnp.asarray(lmat), jnp.asarray(rmat), jnp.asarray(gg_t))

    return coords.reshape(b, c, 2, ho, wo), vals.reshape(b, c, ho, wo)


# --------------------------------------------------------------------------
# Public wrapper (matches kornia.conv_soft_argmax2d semantics).
# --------------------------------------------------------------------------
_PATH_A_PMAT_LIMIT = 4 << 20   # max bytes of the full 2-D pooling matrix


def conv_soft_argmax2d(x, kernel_size=(3, 3), stride=(1, 1), padding=(1, 1),
                       temperature=1.0, normalized_coordinates=True,
                       eps=1e-8, output_value=False):
    if x.ndim != 4:
        raise ValueError(f"Invalid input shape, expected BxCxHxW, got {x.shape}")
    if float(temperature) <= 0:
        raise ValueError("Temperature should be positive")

    b, c, h, w = x.shape
    ky, kx = kernel_size
    sy, sx = stride
    py, px = padding
    ho = (h + 2 * py - ky) // sy + 1
    wo = (w + 2 * px - kx) // sx + 1

    if normalized_coordinates:
        scale_x = 2.0 / max(float(w - 1), 1e-8)
        scale_y = 2.0 / max(float(h - 1), 1e-8)
        off = -1.0
    else:
        scale_x = scale_y = 1.0
        off = 0.0

    gg = _grid_global_pooled(h, w, ky, kx, stride, padding)       # (2, ho, wo)
    inv_t = 1.0 / float(temperature)
    args = (x, b, c, h, w, ho, wo, ky, kx, sy, sx, py, px,
            inv_t, eps, scale_x, scale_y, off, gg, x.dtype)

    pmat_bytes = h * w * 3 * ho * wo * 4
    if pmat_bytes <= _PATH_A_PMAT_LIMIT:
        coords, vals = _run_dense(*args)
    else:
        # TODO(synk): v5e 3x3/stride-1 shifted-add stencil specialization
        # (pltpu.roll + VALU adds) for very large heatmaps.
        coords, vals = _run_band(*args)

    if output_value:
        return coords, vals
    return coords


class ConvSoftArgmax2d:
    """JAX/Pallas re-implementation of kornia's ConvSoftArgmax2d module."""

    def __init__(self, kernel_size=(3, 3), stride=(1, 1), padding=(1, 1),
                 temperature=1.0, normalized_coordinates=True, eps=1e-8,
                 output_value=False):
        self.kernel_size = kernel_size
        self.stride = stride
        self.padding = padding
        self.temperature = temperature
        self.normalized_coordinates = normalized_coordinates
        self.eps = eps
        self.output_value = output_value

    def __call__(self, x):
        return conv_soft_argmax2d(x, self.kernel_size, self.stride, self.padding,
                                  self.temperature, self.normalized_coordinates,
                                  self.eps, self.output_value)


# --------------------------------------------------------------------------
# Independent numpy reference (mimics the PyTorch ops directly)
# --------------------------------------------------------------------------
def _reference_numpy(x, kernel_size, stride, padding, temperature,
                     normalized_coordinates, eps):
    x = np.asarray(x, dtype=np.float64)
    b, c, h, w = x.shape
    ky, kx = kernel_size
    sy, sx = stride
    py, px = padding
    ho = (h + 2 * py - ky) // sy + 1
    wo = (w + 2 * px - kx) // sx + 1

    xr = x.reshape(b * c, h, w)
    xm = xr.max(axis=(1, 2), keepdims=True)
    e = np.exp((xr - xm) / temperature)
    e_pad = np.pad(e, ((0, 0), (py, py), (px, px)))
    ex_pad = np.pad(e * xr, ((0, 0), (py, py), (px, px)))

    wx = 2.0 * np.arange(kx) / max(kx - 1, 1e-8) - 1.0
    wy = 2.0 * np.arange(ky) / max(ky - 1, 1e-8) - 1.0

    den = np.zeros((b * c, ho, wo))
    num_v = np.zeros_like(den)
    num_x = np.zeros_like(den)
    num_y = np.zeros_like(den)
    for oy in range(ho):
        for ox in range(wo):
            y0, x0 = oy * sy, ox * sx
            we = e_pad[:, y0:y0 + ky, x0:x0 + kx]
            wex = ex_pad[:, y0:y0 + ky, x0:x0 + kx]
            den[:, oy, ox] = we.sum(axis=(1, 2))
            num_v[:, oy, ox] = wex.sum(axis=(1, 2))
            num_x[:, oy, ox] = (we * wx[None, None, :]).sum(axis=(1, 2))
            num_y[:, oy, ox] = (we * wy[None, :, None]).sum(axis=(1, 2))

    den = den + eps
    vals = (num_v / den).reshape(b, c, ho, wo)
    gg = _grid_global_pooled(h, w, ky, kx, stride, padding).astype(np.float64)
    cx = num_x / den + gg[0][None]
    cy = num_y / den + gg[1][None]
    if normalized_coordinates:
        cx = cx * (2.0 / max(w - 1, 1e-8)) - 1.0
        cy = cy * (2.0 / max(h - 1, 1e-8)) - 1.0
    coords = np.stack([cx, cy], axis=1).reshape(b, c, 2, ho, wo)
    return coords.astype(np.float32), vals.astype(np.float32)


if __name__ == "__main__":
    # Test 1: module API, 16x16 heatmaps, stride 1 (lane-dense Path A).
    key = jax.random.PRNGKey(0)
    x = jax.random.normal(key, (2, 4, 16, 16), dtype=jnp.float32)
    module = ConvSoftArgmax2d(kernel_size=(3, 3), stride=(1, 1), padding=(1, 1),
                              temperature=1.0, normalized_coordinates=True,
                              eps=1e-8, output_value=True)
    coords, vals = module(x)
    jax.block_until_ready((coords, vals))
    assert coords.shape == (2, 4, 2, 16, 16)
    assert vals.shape == (2, 4, 16, 16)
    ref_coords, ref_vals = _reference_numpy(
        np.asarray(x), (3, 3), (1, 1), (1, 1), 1.0, True, 1e-8)
    # Default (single-pass) MXU precision dominates the error budget; val now
    # uses an exact divide, approx reciprocal is used for coordinates only.
    np.testing.assert_allclose(np.asarray(coords), ref_coords, rtol=2e-2, atol=3e-3)
    np.testing.assert_allclose(np.asarray(vals), ref_vals, rtol=2e-2, atol=1e-2)

    # Test 2: stride 2, B*C = 18 (not a multiple of the plane batch -> ragged
    # edge block handled by Pallas masking, no wrapper-side padding pass).
    key2 = jax.random.PRNGKey(1)
    x2 = jax.random.normal(key2, (2, 9, 16, 16), dtype=jnp.float32)
    coords2, vals2 = conv_soft_argmax2d(x2, (3, 3), (2, 2), (1, 1),
                                        temperature=1.0, normalized_coordinates=True,
                                        eps=1e-8, output_value=True)
    jax.block_until_ready((coords2, vals2))
    assert coords2.shape == (2, 9, 2, 8, 8)
    assert vals2.shape == (2, 9, 8, 8)
    ref_coords2, ref_vals2 = _reference_numpy(
        np.asarray(x2), (3, 3), (2, 2), (1, 1), 1.0, True, 1e-8)
    np.testing.assert_allclose(np.asarray(coords2), ref_coords2, rtol=2e-2, atol=3e-3)
    np.testing.assert_allclose(np.asarray(vals2), ref_vals2, rtol=2e-2, atol=1e-2)

    # Test 3: larger heatmap -> generic band-matrix fallback (Path B).
    key3 = jax.random.PRNGKey(2)
    x3 = jax.random.normal(key3, (1, 3, 24, 32), dtype=jnp.float32)
    coords3, vals3 = conv_soft_argmax2d(x3, (3, 3), (1, 1), (1, 1),
                                        temperature=1.0, normalized_coordinates=True,
                                        eps=1e-8, output_value=True)
    jax.block_until_ready((coords3, vals3))
    assert coords3.shape == (1, 3, 2, 24, 32)
    assert vals3.shape == (1, 3, 24, 32)
    ref_coords3, ref_vals3 = _reference_numpy(
        np.asarray(x3), (3, 3), (1, 1), (1, 1), 1.0, True, 1e-8)
    np.testing.assert_allclose(np.asarray(coords3), ref_coords3, rtol=2e-2, atol=3e-3)
    np.testing.assert_allclose(np.asarray(vals3), ref_vals3, rtol=2e-2, atol=1e-2)

    print("KERNEL_OK")
</pallas_src>

<mosaic_0001>
module attributes {stable_mosaic.version = 11 : i64} {
  func.func @_csa_kernel_dense(%arg0: i32, %arg1: memref<8x256xf32, #tpu.memory_space<vmem>>, %arg2: memref<256x768xf32, #tpu.memory_space<vmem>>, %arg3: memref<2x512xf32, #tpu.memory_space<vmem>>, %arg4: memref<8x512xf32, #tpu.memory_space<vmem>>, %arg5: memref<8x256xf32, #tpu.memory_space<vmem>>) attributes {dimension_semantics = [#tpu.dimension_semantics<parallel>], iteration_bounds = array<i64: 1>, scalar_prefetch = 0 : i64, scratch_operands = 0 : i64, tpu.core_type = #tpu.core_type<tc>, window_params = [{transform_indices = @transform_0, window_bounds = array<i64: 8, 256>}, {pipeline_mode = #tpu.pipeline_mode<synchronous>, transform_indices = @transform_1, window_bounds = array<i64: 256, 768>}, {pipeline_mode = #tpu.pipeline_mode<synchronous>, transform_indices = @transform_2, window_bounds = array<i64: 2, 512>}, {transform_indices = @transform_3, window_bounds = array<i64: 8, 512>}, {transform_indices = @transform_4, window_bounds = array<i64: 8, 256>}]} {
    %c0 = arith.constant 0 : index
    %c0_0 = arith.constant 0 : index
    %0 = vector.load %arg1[%c0, %c0_0] : memref<8x256xf32, #tpu.memory_space<vmem>>, vector<8x256xf32>
    %cst = arith.constant dense<0xFF800000> : vector<8xf32>
    %1 = vector.multi_reduction <maximumf>, %0, %cst [1] : vector<8x256xf32> to vector<8xf32>
    %2 = vector.shape_cast %1 : vector<8xf32> to vector<8x1xf32>
    %3 = vector.broadcast %2 : vector<8x1xf32> to vector<8x256xf32>
    %4 = arith.subf %0, %3 : vector<8x256xf32>
    %cst_1 = arith.constant 1.000000e+00 : f32
    %5 = vector.broadcast %cst_1 : f32 to vector<8x256xf32>
    %6 = arith.mulf %4, %5 : vector<8x256xf32>
    %7 = math.exp %6 : vector<8x256xf32>
    %c0_2 = arith.constant 0 : index
    %c0_3 = arith.constant 0 : index
    %8 = vector.load %arg2[%c0_2, %c0_3] : memref<256x768xf32, #tpu.memory_space<vmem>>, vector<256x768xf32>
    %cst_4 = arith.constant dense<0.000000e+00> : vector<8x768xf32>
    %9 = tpu.matmul %7, %8, %cst_4 {dimension_numbers = #tpu.dot_dimension_numbers<[1], [0], [0], [1], [0, 0, 1, 1], [], []>} : vector<8x256xf32>, vector<256x768xf32>, vector<8x768xf32> -> vector<8x768xf32>
    %10 = arith.mulf %7, %0 : vector<8x256xf32>
    %c0_5 = arith.constant 0 : index
    %c0_6 = arith.constant 0 : index
    %11 = vector.load %arg2[%c0_5, %c0_6] : memref<256x768xf32, #tpu.memory_space<vmem>>, vector<256x256xf32>
    %cst_7 = arith.constant dense<0.000000e+00> : vector<8x256xf32>
    %12 = tpu.matmul %10, %11, %cst_7 {dimension_numbers = #tpu.dot_dimension_numbers<[1], [0], [0], [1], [0, 0, 1, 1], [], []>} : vector<8x256xf32>, vector<256x256xf32>, vector<8x256xf32> -> vector<8x256xf32>
    %13 = vector.extract_strided_slice %9 {offsets = [0, 0], sizes = [8, 256], strides = [1, 1]} : vector<8x768xf32> to vector<8x256xf32>
    %cst_8 = arith.constant 9.99999993E-9 : f32
    %14 = vector.broadcast %cst_8 : f32 to vector<8x256xf32>
    %15 = arith.addf %13, %14 : vector<8x256xf32>
    %16 = tpu.reciprocal %15 {approx = true} : vector<8x256xf32> -> vector<8x256xf32>
    %17 = vector.extract_strided_slice %9 {offsets = [0, 256], sizes = [8, 256], strides = [1, 1]} : vector<8x768xf32> to vector<8x256xf32>
    %18 = arith.mulf %17, %16 : vector<8x256xf32>
    %19 = vector.extract_strided_slice %9 {offsets = [0, 512], sizes = [8, 256], strides = [1, 1]} : vector<8x768xf32> to vector<8x256xf32>
    %20 = arith.mulf %19, %16 : vector<8x256xf32>
    %21 = tpu.concatenate %18, %20 in 1 : vector<8x256xf32>, vector<8x256xf32> -> vector<8x512xf32>
    %c0_9 = arith.constant 0 : index
    %c0_10 = arith.constant 0 : index
    %22 = vector.load %arg3[%c0_9, %c0_10] : memref<2x512xf32, #tpu.memory_space<vmem>>, vector<1x512xf32>
    %23 = vector.broadcast %22 : vector<1x512xf32> to vector<8x512xf32>
    %24 = arith.mulf %21, %23 : vector<8x512xf32>
    %c1 = arith.constant 1 : index
    %c0_11 = arith.constant 0 : index
    %25 = vector.load %arg3[%c1, %c0_11] : memref<2x512xf32, #tpu.memory_space<vmem>>, vector<1x512xf32>
    %26 = vector.broadcast %25 : vector<1x512xf32> to vector<8x512xf32>
    %27 = arith.addf %24, %26 : vector<8x512xf32>
    %c0_12 = arith.constant 0 : index
    %c0_13 = arith.constant 0 : index
    %28 = vector.load %arg4[%c0_12, %c0_13] : memref<8x512xf32, #tpu.memory_space<vmem>>, vector<8x512xf32>
    tpu.vector_store %arg4[%c0_12, %c0_13], %27 {strides = array<i32>} : memref<8x512xf32, #tpu.memory_space<vmem>>, vector<8x512xf32>,
    %29 = arith.divf %12, %15 : vector<8x256xf32>
    %c0_14 = arith.constant 0 : index
    %c0_15 = arith.constant 0 : index
    %30 = vector.load %arg5[%c0_14, %c0_15] : memref<8x256xf32, #tpu.memory_space<vmem>>, vector<8x256xf32>
    tpu.vector_store %arg5[%c0_14, %c0_15], %29 {strides = array<i32>} : memref<8x256xf32, #tpu.memory_space<vmem>>, vector<8x256xf32>,
    return
  }
  func.func @transform_0(%arg0: i32) -> (i32, i32) {
    %c0_i32 = arith.constant 0 : i32
    %c0_i32_0 = arith.constant 0 : i32
    return %arg0, %c0_i32 : i32, i32
  }
  func.func @transform_1(%arg0: i32) -> (i32, i32) {
    %c0_i32 = arith.constant 0 : i32
    %c0_i32_0 = arith.constant 0 : i32
    %c0_i32_1 = arith.constant 0 : i32
    return %c0_i32, %c0_i32_0 : i32, i32
  }
  func.func @transform_2(%arg0: i32) -> (i32, i32) {
    %c0_i32 = arith.constant 0 : i32
    %c0_i32_0 = arith.constant 0 : i32
    %c0_i32_1 = arith.constant 0 : i32
    return %c0_i32, %c0_i32_0 : i32, i32
  }
  func.func @transform_3(%arg0: i32) -> (i32, i32) {
    %c0_i32 = arith.constant 0 : i32
    %c0_i32_0 = arith.constant 0 : i32
    return %arg0, %c0_i32 : i32, i32
  }
  func.func @transform_4(%arg0: i32) -> (i32, i32) {
    %c0_i32 = arith.constant 0 : i32
    %c0_i32_0 = arith.constant 0 : i32
    return %arg0, %c0_i32 : i32, i32
  }
}

</mosaic_0001>

<bundles_post_ra>
// kernel: tpu_custom_call.1
= control target key start
LH: loop header
LB: loop body
LE: loop exit
PB: predicated region body
PF: predicated region fallthrough
CT: control target
= control target key end

     0   :  { %10 = vsyncpa [#allocation3], 0  ;;  %s1243_s0 = inlined_call_operand.hbm [shape: f32[8,256], index: 0, kind: input, shape index: {}]   ;;  %s1244_s1 = inlined_call_operand.hbm [shape: f32[256,768], index: 1, kind: input, shape index: {}]   ;;  %s1245_s2 = inlined_call_operand.hbm [shape: f32[2,512], index: 2, kind: input, shape index: {}]   ;;  %s1246_s3 = inlined_call_operand.hbm [shape: f32[8,512], index: 3, kind: output, shape index: {0}]   ;;  %s1247_s4 = inlined_call_operand.hbm [shape: f32[8,256], index: 4, kind: output, shape index: {1}]  }
   0x1   :  { %11 = vsyncpa [#allocation6], 0 }
   0x2   :  { %12 = vsyncpa [#allocation4], 0  ;;  %s29_s17 = sshll.u32 %s1244_s1, 4  ;;  %s30_s17 = int_to_ptr.hbm [resolvable:$true] %s29_s17 }
   0x3   :  { %13 = vsyncpa [#allocation10], 0  ;;  %s900_s18 = smov [#allocation5]   ;;  %s19_s22 = sshll.u32 %s1243_s0, 4  ;;  %s20_s22 = int_to_ptr.hbm [resolvable:$true] %s19_s22 }
   0x4   :  { %s31_s19 = sshll.u32 %s900_s18, 4  ;;  %s901_s23 = smov 768   ;;  %s32_s19 = int_to_ptr.vmem [resolvable:$true] %s31_s19 }
   0x5   :  { %s902_s24 = smov 48   ;;  %s903_s25 = smov [#allocation2]  }
   0x6   :  { %37 = dma.hbm_to_vmem [thread:$0]  %s30_s17, 24576, %s32_s19, [#allocation6], %s901_s23, %s901_s23, %s902_s24  }
   0x7   :  { %s21_s26 = sshll.u32 %s903_s25, 4  ;;  %s43_s29 = sshll.u32 %s1245_s2, 4  ;;  %s22_s26 = int_to_ptr.vmem [resolvable:$true] %s21_s26  ;;  %s44_s29 = int_to_ptr.hbm [resolvable:$true] %s43_s29 }
   0x8   :  { %24 = dma.hbm_to_vmem [thread:$0]  %s20_s22, 256, %s22_s26, [#allocation3]  }
   0x9   :  { %s904_s1 = smov [#allocation7]  }
   0xa   :  { %s45_s30 = sshll.u32 %s904_s1, 4  ;;  %s46_s30 = int_to_ptr.vmem [resolvable:$true] %s45_s30 }
   0xb   :  { %48 = dma.hbm_to_vmem [thread:$0]  %s44_s29, 128, %s46_s30, [#allocation6]  }
   0xc   :  { %892 = dma.done.wait [#allocation3], 256  }
   0xd   :  { %893 = vsyncadd [#allocation3], 4294967040 }
   0xe   :  { %894 = dma.done.wait [#allocation6], 24704  }
   0xf   :  { %895 = vsyncadd [#allocation6], 4294942592  ;;  %v941_v0 = vld [vmem:[#allocation2] sm:$0xff]  ;;  %v943_v1 = vld [vmem:[#allocation2 + $0x8] sm:$0xff]  ;;  %s905_s0 = smov [#allocation8]   ;;  %s730_s7 = sshll.u32 %s1246_s3, 4  ;;  %s731_s7 = int_to_ptr.hbm [resolvable:$true] %s730_s7 }
  0x10   :  { %1268 = vst [vmem:[#allocation15_spill] sm:$0xff] %v941_v0  ;;  %v945_v2 = vld [vmem:[#allocation5 + $0x2d0] sm:$0xff]  ;;  %v63_v3 = vmax.f32 %v941_v0, %v943_v1  ;;  %v952_v5 = vld [vmem:[#allocation5 + $0x2d8] sm:$0xff]  ;;  %v958_v7 = vld [vmem:[#allocation5 + $0x2a0] sm:$0xff]  ;;  %s728_s2 = sshll.u32 %s905_s0, 4  ;;  %s906_s8 = smov [#allocation9]   ;;  %s729_s2 = int_to_ptr.vmem [resolvable:$true] %s728_s2 }
  0x11   :  { %1269 = vst [vmem:[#allocation16_spill] sm:$0xff] %v943_v1  ;;  %264 = vmatpush.msra.mxu0 %v945_v2  ;;  %v950_v4 = vld [vmem:[#allocation5 + $0x5d0] sm:$0xff]  ;;  %v954_v6 = vld [vmem:[#allocation5 + $0x5d8] sm:$0xff]  ;;  %304 = vmatpush.msra.mxu2 %v952_v5  ;;  %v960_v8 = vld [vmem:[#allocation5 + $0x5a0] sm:$0xff]  ;;  %s739_s9 = sshll.u32 %s906_s8, 4  ;;  %s741_s12 = sshll.u32 %s1247_s4, 4  ;;  %s740_s9 = int_to_ptr.vmem [resolvable:$true] %s739_s9  ;;  %s742_s12 = int_to_ptr.hbm [resolvable:$true] %s741_s12 }
  0x12   :  { %284 = vmatpush.msra.mxu1 %v950_v4  ;;  %v962_v9 = vld [vmem:[#allocation5 + $0x2a8] sm:$0xff]  ;;  %64 = vmax.xlane.f32.xlu0 %v63_v3  ;;  %v967_v11 = vld [vmem:[#allocation5 + $0x270] sm:$0xff]  ;;  %v973_v13 = vld [vmem:[#allocation5 + $0x278] sm:$0xff] }
  0x13   :  { %324 = vmatpush.msra.mxu3 %v954_v6  ;;  %v965_v10 = vld [vmem:[#allocation5 + $0x5a8] sm:$0xff]  ;;  %v969_v12 = vld [vmem:[#allocation5 + $0x570] sm:$0xff]  ;;  %265 = vmatpush.msra.mxu0 %v958_v7  ;;  %v975_v14 = vld [vmem:[#allocation5 + $0x578] sm:$0xff] }
  0x14   :  { %285 = vmatpush.msra.mxu1 %v960_v8  ;;  %305 = vmatpush.msra.mxu2 %v962_v9  ;;  %v979_v15 = vld [vmem:[#allocation5 + $0x240] sm:$0xff]  ;;  %v985_v17 = vld [vmem:[#allocation5 + $0x248] sm:$0xff]  ;;  %v991_v19 = vld [vmem:[#allocation5 + $0x210] sm:$0xff] }
  0x15   :  { %325 = vmatpush.msra.mxu3 %v965_v10  ;;  %v981_v16 = vld [vmem:[#allocation5 + $0x540] sm:$0xff]  ;;  %266 = vmatpush.msra.mxu0 %v967_v11  ;;  %v987_v18 = vld [vmem:[#allocation5 + $0x548] sm:$0xff]  ;;  %v993_v20 = vld [vmem:[#allocation5 + $0x510] sm:$0xff] }
  0x16   :  { %286 = vmatpush.msra.mxu1 %v969_v12  ;;  %306 = vmatpush.msra.mxu2 %v973_v13  ;;  %v997_v21 = vld [vmem:[#allocation5 + $0x218] sm:$0xff]  ;;  %v1003_v23 = vld [vmem:[#allocation5 + $0x1e0] sm:$0xff]  ;;  %v1009_v25 = vld [vmem:[#allocation5 + $0x1e8] sm:$0xff] }
  0x17   :  { %326 = vmatpush.msra.mxu3 %v975_v14  ;;  %267 = vmatpush.msra.mxu0 %v979_v15  ;;  %v999_v22 = vld [vmem:[#allocation5 + $0x518] sm:$0xff]  ;;  %v1005_v24 = vld [vmem:[#allocation5 + $0x4e0] sm:$0xff]  ;;  %v1011_v26 = vld [vmem:[#allocation5 + $0x4e8] sm:$0xff] }
  0x18   :  { %287 = vmatpush.msra.mxu1 %v981_v16  ;;  %307 = vmatpush.msra.mxu2 %v985_v17  ;;  %v1015_v27 = vld [vmem:[#allocation5 + $0x1b0] sm:$0xff]  ;;  %v1021_v29 = vld [vmem:[#allocation5 + $0x1b8] sm:$0xff]  ;;  %v1027_v31 = vld [vmem:[#allocation5 + $0x180] sm:$0xff] }
  0x19   :  { %327 = vmatpush.msra.mxu3 %v987_v18  ;;  %268 = vmatpush.msra.mxu0 %v991_v19  ;;  %v1017_v28 = vld [vmem:[#allocation5 + $0x4b0] sm:$0xff]  ;;  %v1023_v30 = vld [vmem:[#allocation5 + $0x4b8] sm:$0xff]  ;;  %v1029_v32 = vld [vmem:[#allocation5 + $0x480] sm:$0xff] }
  0x1a   :  { %288 = vmatpush.msra.mxu1 %v993_v20  ;;  %308 = vmatpush.msra.mxu2 %v997_v21  ;;  %v1033_v33 = vld [vmem:[#allocation5 + $0x188] sm:$0xff]  ;;  %v1039_v35 = vld [vmem:[#allocation5 + $0x150] sm:$0xff]  ;;  %v1045_v37 = vld [vmem:[#allocation5 + $0x158] sm:$0xff] }
  0x1b   :  { %328 = vmatpush.msra.mxu3 %v999_v22  ;;  %269 = vmatpush.msra.mxu0 %v1003_v23  ;;  %v1035_v34 = vld [vmem:[#allocation5 + $0x488] sm:$0xff]  ;;  %v1041_v36 = vld [vmem:[#allocation5 + $0x450] sm:$0xff]  ;;  %v1047_v38 = vld [vmem:[#allocation5 + $0x458] sm:$0xff] }
  0x1c   :  { %289 = vmatpush.msra.mxu1 %v1005_v24  ;;  %309 = vmatpush.msra.mxu2 %v1009_v25  ;;  %v1051_v39 = vld [vmem:[#allocation5 + $0x120] sm:$0xff]  ;;  %v1057_v41 = vld [vmem:[#allocation5 + $0x128] sm:$0xff]  ;;  %v1063_v43 = vld [vmem:[#allocation5 + $0xf0] sm:$0xff] }
  0x1d   :  { %329 = vmatpush.msra.mxu3 %v1011_v26  ;;  %270 = vmatpush.msra.mxu0 %v1015_v27  ;;  %v1053_v40 = vld [vmem:[#allocation5 + $0x420] sm:$0xff]  ;;  %v1059_v42 = vld [vmem:[#allocation5 + $0x428] sm:$0xff]  ;;  %v1065_v44 = vld [vmem:[#allocation5 + $0x3f0] sm:$0xff] }
  0x1e   :  { %290 = vmatpush.msra.mxu1 %v1017_v28  ;;  %310 = vmatpush.msra.mxu2 %v1021_v29  ;;  %v1069_v45 = vld [vmem:[#allocation5 + $0xf8] sm:$0xff]  ;;  %v1075_v47 = vld [vmem:[#allocation5 + $0xc0] sm:$0xff]  ;;  %v1081_v49 = vld [vmem:[#allocation5 + $0xc8] sm:$0xff] }
  0x1f   :  { %330 = vmatpush.msra.mxu3 %v1023_v30  ;;  %271 = vmatpush.msra.mxu0 %v1027_v31  ;;  %v1071_v46 = vld [vmem:[#allocation5 + $0x3f8] sm:$0xff]  ;;  %v1077_v48 = vld [vmem:[#allocation5 + $0x3c0] sm:$0xff]  ;;  %1270 = vst [vmem:[#allocation17_spill] sm:$0xff] %v1081_v49  ;;  %v1083_v50 = vld [vmem:[#allocation5 + $0x3c8] sm:$0xff] }
  0x20   :  { %291 = vmatpush.msra.mxu1 %v1029_v32  ;;  %311 = vmatpush.msra.mxu2 %v1033_v33  ;;  %1271 = vst [vmem:[#allocation18_spill] sm:$0xff] %v1083_v50  ;;  %v1087_v51 = vld [vmem:[#allocation5 + $0x90] sm:$0xff]  ;;  %v1093_v53 = vld [vmem:[#allocation5 + $0x98] sm:$0xff]  ;;  %v1099_v55 = vld [vmem:[#allocation5 + $0x60] sm:$0xff] }
  0x21   :  { %331 = vmatpush.msra.mxu3 %v1035_v34  ;;  %272 = vmatpush.msra.mxu0 %v1039_v35  ;;  %1272 = vst [vmem:[#allocation19_spill] sm:$0xff] %v1087_v51  ;;  %v1089_v52 = vld [vmem:[#allocation5 + $0x390] sm:$0xff]  ;;  %v1095_v54 = vld [vmem:[#allocation5 + $0x398] sm:$0xff]  ;;  %v1101_v56 = vld [vmem:[#allocation5 + $0x360] sm:$0xff] }
  0x22   :  { %292 = vmatpush.msra.mxu1 %v1041_v36  ;;  %312 = vmatpush.msra.mxu2 %v1045_v37  ;;  %1273 = vst [vmem:[#allocation20_spill] sm:$0xff] %v1089_v52  ;;  %v1105_v57 = vld [vmem:[#allocation5 + $0x68] sm:$0xff]  ;;  %v1111_v59 = vld [vmem:[#allocation5 + $0x30] sm:$0xff]  ;;  %v1117_v61 = vld [vmem:[#allocation5 + $0x38] sm:$0xff] }
  0x23   :  { %332 = vmatpush.msra.mxu3 %v1047_v38  ;;  %273 = vmatpush.msra.mxu0 %v1051_v39  ;;  %1274 = vst [vmem:[#allocation21_spill] sm:$0xff] %v1093_v53  ;;  %v1107_v58 = vld [vmem:[#allocation5 + $0x368] sm:$0xff]  ;;  %v1113_v60 = vld [vmem:[#allocation5 + $0x330] sm:$0xff]  ;;  %v1119_v62 = vld [vmem:[#allocation5 + $0x338] sm:$0xff] }
  0x24   :  { %293 = vmatpush.msra.mxu1 %v1053_v40  ;;  %313 = vmatpush.msra.mxu2 %v1057_v41  ;;  %1275 = vst [vmem:[#allocation22_spill] sm:$0xff] %v1095_v54  ;;  %v1123_v63 = vld [vmem:[#allocation5] sm:$0xff] }
  0x25   :  { %333 = vmatpush.msra.mxu3 %v1059_v42  ;;  %274 = vmatpush.msra.mxu0 %v1063_v43  ;;  %1276 = vst [vmem:[#allocation23_spill] sm:$0xff] %v1099_v55  ;;  %v1125_v3 = vld [vmem:[#allocation5 + $0x300] sm:$0xff] }
  0x26   :  { %294 = vmatpush.msra.mxu1 %v1065_v44  ;;  %314 = vmatpush.msra.mxu2 %v1069_v45  ;;  %1277 = vst [vmem:[#allocation24_spill] sm:$0xff] %v1101_v56 }
  0x27   :  { %334 = vmatpush.msra.mxu3 %v1071_v46  ;;  %275 = vmatpush.msra.mxu0 %v1075_v47  ;;  %1278 = vst [vmem:[#allocation25_spill] sm:$0xff] %v1105_v57 }
  0x28   :  { %295 = vmatpush.msra.mxu1 %v1077_v48  ;;  %315 = vmatpush.msra.mxu2 %v1081_v49  ;;  %1279 = vst [vmem:[#allocation26_spill] sm:$0xff] %v1107_v58  ;;  %v243_v49 = vld [vmem:[#allocation5 + $0x558] sm:$0xff] }
  0x29   :  { %335 = vmatpush.msra.mxu3 %v1083_v50  ;;  %276 = vmatpush.msra.mxu0 %v1087_v51  ;;  %1280 = vst [vmem:[#allocation27_spill] sm:$0xff] %v1111_v59  ;;  %v248_v51 = vld [vmem:[#allocation5 + $0x580] sm:$0xff]  ;;  %v146_v50 = vld [vmem:[#allocation5 + $0x250] sm:$0xff] }
  0x2a   :  { %296 = vmatpush.msra.mxu1 %v1089_v52  ;;  %316 = vmatpush.msra.mxu2 %v1093_v53  ;;  %1281 = vst [vmem:[#allocation28_spill] sm:$0xff] %v1113_v60  ;;  %v261_v53 = vld [vmem:[#allocation5 + $0x5e8] sm:$0xff]  ;;  %v159_v52 = vld [vmem:[#allocation5 + $0x2b8] sm:$0xff] }
  0x2b   :  { %336 = vmatpush.msra.mxu3 %v1095_v54  ;;  %277 = vmatpush.msra.mxu0 %v1099_v55  ;;  %1282 = vst [vmem:[#allocation29_spill] sm:$0xff] %v1117_v61  ;;  %v1129_v54 = vld [vmem:[#allocation5 + $0x8] sm:$0xff] }
  0x2c   :  { %297 = vmatpush.msra.mxu1 %v1101_v56  ;;  %1283 = vst [vmem:[#allocation30_spill] sm:$0xff] %v1119_v62  ;;  %317 = vmatpush.msra.mxu2 %v1105_v57  ;;  %v1131_v55 = vld [vmem:[#allocation5 + $0x308] sm:$0xff]  ;;  %v164_v56 = vld [vmem:[#allocation5 + $0x2e0] sm:$0xff] }
  0x2d   :  { %337 = vmatpush.msra.mxu3 %v1107_v58  ;;  %1284 = vst [vmem:[#allocation31_spill] sm:$0xff] %v1123_v63  ;;  %278 = vmatpush.msra.mxu0 %v1111_v59  ;;  %v260_v57 = vld [vmem:[#allocation5 + $0x5e0] sm:$0xff]  ;;  %v165_v58 = vld [vmem:[#allocation5 + $0x2e8] sm:$0xff]  ;;  %v254_v59 = vld [vmem:[#allocation5 + $0x5b0] sm:$0xff] }
  0x2e   :  { %1285 = vst [vmem:[#allocation32_spill] sm:$0xff] %v1125_v3  ;;  %298 = vmatpush.msra.mxu1 %v1113_v60  ;;  %318 = vmatpush.msra.mxu2 %v1117_v61  ;;  %v158_v60 = vld [vmem:[#allocation5 + $0x2b0] sm:$0xff]  ;;  %v255_v61 = vld [vmem:[#allocation5 + $0x5b8] sm:$0xff] }
  0x2f   :  { %1286 = vst [vmem:[#allocation33_spill] sm:$0xff] %v1129_v54  ;;  %338 = vmatpush.msra.mxu3 %v1119_v62  ;;  %279 = vmatpush.msra.mxu0 %v1123_v63  ;;  %v152_v62 = vld [vmem:[#allocation5 + $0x280] sm:$0xff]  ;;  %v153_v63 = vld [vmem:[#allocation5 + $0x288] sm:$0xff] }
  0x30   :  { %1287 = vst [vmem:[#allocation34_spill] sm:$0xff] %v1131_v55  ;;  %299 = vmatpush.msra.mxu1 %v1125_v3  ;;  %319 = vmatpush.msra.mxu2 %v1129_v54  ;;  %v249_v3 = vld [vmem:[#allocation5 + $0x588] sm:$0xff]  ;;  %v242_v54 = vld [vmem:[#allocation5 + $0x550] sm:$0xff] }
  0x31   :  { %339 = vmatpush.msra.mxu3 %v1131_v55  ;;  %344 = vmatpush.msrb.mxu0 %v164_v56  ;;  %v147_v55 = vld [vmem:[#allocation5 + $0x258] sm:$0xff]  ;;  %v140_v56 = vld [vmem:[#allocation5 + $0x220] sm:$0xff] }
  0x32   :  { %364 = vmatpush.msrb.mxu1 %v260_v57  ;;  %384 = vmatpush.msrb.mxu2 %v165_v58  ;;  %v236_v57 = vld [vmem:[#allocation5 + $0x520] sm:$0xff]  ;;  %v237_v58 = vld [vmem:[#allocation5 + $0x528] sm:$0xff] }
  0x33   :  { %404 = vmatpush.msrb.mxu3 %v261_v53  ;;  %345 = vmatpush.msrb.mxu0 %v158_v60  ;;  %v141_v53 = vld [vmem:[#allocation5 + $0x228] sm:$0xff]  ;;  %v230_v60 = vld [vmem:[#allocation5 + $0x4f0] sm:$0xff] }
  0x34   :  { %365 = vmatpush.msrb.mxu1 %v254_v59  ;;  %385 = vmatpush.msrb.mxu2 %v159_v52  ;;  %v134_v59 = vld [vmem:[#allocation5 + $0x1f0] sm:$0xff]  ;;  %v135_v52 = vld [vmem:[#allocation5 + $0x1f8] sm:$0xff] }
  0x35   :  { %405 = vmatpush.msrb.mxu3 %v255_v61  ;;  %346 = vmatpush.msrb.mxu0 %v152_v62  ;;  %v231_v61 = vld [vmem:[#allocation5 + $0x4f8] sm:$0xff]  ;;  %v224_v62 = vld [vmem:[#allocation5 + $0x4c0] sm:$0xff] }
  0x36   :  { %366 = vmatpush.msrb.mxu1 %v248_v51  ;;  %386 = vmatpush.msrb.mxu2 %v153_v63  ;;  %v128_v51 = vld [vmem:[#allocation5 + $0x1c0] sm:$0xff]  ;;  %v129_v63 = vld [vmem:[#allocation5 + $0x1c8] sm:$0xff] }
  0x37   :  { %406 = vmatpush.msrb.mxu3 %v249_v3  ;;  %347 = vmatpush.msrb.mxu0 %v146_v50  ;;  %v225_v3 = vld [vmem:[#allocation5 + $0x4c8] sm:$0xff]  ;;  %v122_v50 = vld [vmem:[#allocation5 + $0x190] sm:$0xff] }
  0x38   :  { %367 = vmatpush.msrb.mxu1 %v242_v54  ;;  %387 = vmatpush.msrb.mxu2 %v147_v55  ;;  %v218_v54 = vld [vmem:[#allocation5 + $0x490] sm:$0xff]  ;;  %v219_v55 = vld [vmem:[#allocation5 + $0x498] sm:$0xff] }
  0x39   :  { %407 = vmatpush.msrb.mxu3 %v243_v49  ;;  %348 = vmatpush.msrb.mxu0 %v140_v56  ;;  %v123_v49 = vld [vmem:[#allocation5 + $0x198] sm:$0xff]  ;;  %v116_v56 = vld [vmem:[#allocation5 + $0x160] sm:$0xff] }
  0x3a   :  { %368 = vmatpush.msrb.mxu1 %v236_v57  ;;  %388 = vmatpush.msrb.mxu2 %v141_v53  ;;  %v212_v57 = vld [vmem:[#allocation5 + $0x460] sm:$0xff]  ;;  %v117_v53 = vld [vmem:[#allocation5 + $0x168] sm:$0xff] }
  0x3b   :  { %408 = vmatpush.msrb.mxu3 %v237_v58  ;;  %349 = vmatpush.msrb.mxu0 %v134_v59  ;;  %v213_v58 = vld [vmem:[#allocation5 + $0x468] sm:$0xff]  ;;  %v110_v59 = vld [vmem:[#allocation5 + $0x130] sm:$0xff] }
  0x3c   :  { %369 = vmatpush.msrb.mxu1 %v230_v60  ;;  %389 = vmatpush.msrb.mxu2 %v135_v52  ;;  %v206_v60 = vld [vmem:[#allocation5 + $0x430] sm:$0xff]  ;;  %v111_v52 = vld [vmem:[#allocation5 + $0x138] sm:$0xff] }
  0x3d   :  { %409 = vmatpush.msrb.mxu3 %v231_v61  ;;  %350 = vmatpush.msrb.mxu0 %v128_v51  ;;  %v207_v61 = vld [vmem:[#allocation5 + $0x438] sm:$0xff]  ;;  %v104_v51 = vld [vmem:[#allocation5 + $0x100] sm:$0xff] }
  0x3e   :  { %370 = vmatpush.msrb.mxu1 %v224_v62  ;;  %390 = vmatpush.msrb.mxu2 %v129_v63  ;;  %v200_v62 = vld [vmem:[#allocation5 + $0x400] sm:$0xff]  ;;  %v105_v63 = vld [vmem:[#allocation5 + $0x108] sm:$0xff] }
  0x3f   :  { %410 = vmatpush.msrb.mxu3 %v225_v3  ;;  %351 = vmatpush.msrb.mxu0 %v122_v50  ;;  %v201_v3 = vld [vmem:[#allocation5 + $0x408] sm:$0xff]  ;;  %v98_v50 = vld [vmem:[#allocation5 + $0xd0] sm:$0xff] }
  0x40   :  { %371 = vmatpush.msrb.mxu1 %v218_v54  ;;  %391 = vmatpush.msrb.mxu2 %v123_v49  ;;  %v194_v54 = vld [vmem:[#allocation5 + $0x3d0] sm:$0xff]  ;;  %v99_v49 = vld [vmem:[#allocation5 + $0xd8] sm:$0xff] }
  0x41   :  { %411 = vmatpush.msrb.mxu3 %v219_v55  ;;  %352 = vmatpush.msrb.mxu0 %v116_v56  ;;  %v195_v55 = vld [vmem:[#allocation5 + $0x3d8] sm:$0xff]  ;;  %v92_v56 = vld [vmem:[#allocation5 + $0xa0] sm:$0xff] }
  0x42   :  { %372 = vmatpush.msrb.mxu1 %v212_v57  ;;  %392 = vmatpush.msrb.mxu2 %v117_v53  ;;  %v188_v57 = vld [vmem:[#allocation5 + $0x3a0] sm:$0xff]  ;;  %v93_v53 = vld [vmem:[#allocation5 + $0xa8] sm:$0xff] }
  0x43   :  { %412 = vmatpush.msrb.mxu3 %v213_v58  ;;  %353 = vmatpush.msrb.mxu0 %v110_v59  ;;  %v189_v58 = vld [vmem:[#allocation5 + $0x3a8] sm:$0xff]  ;;  %v86_v59 = vld [vmem:[#allocation5 + $0x70] sm:$0xff] }
  0x44   :  { %373 = vmatpush.msrb.mxu1 %v206_v60  ;;  %393 = vmatpush.msrb.mxu2 %v111_v52  ;;  %v182_v60 = vld [vmem:[#allocation5 + $0x370] sm:$0xff]  ;;  %v87_v52 = vld [vmem:[#allocation5 + $0x78] sm:$0xff] }
  0x45   :  { %413 = vmatpush.msrb.mxu3 %v207_v61  ;;  %354 = vmatpush.msrb.mxu0 %v104_v51  ;;  %v183_v61 = vld [vmem:[#allocation5 + $0x378] sm:$0xff]  ;;  %v80_v51 = vld [vmem:[#allocation5 + $0x40] sm:$0xff] }
  0x46   :  { %374 = vmatpush.msrb.mxu1 %v200_v62  ;;  %394 = vmatpush.msrb.mxu2 %v105_v63  ;;  %v176_v62 = vld [vmem:[#allocation5 + $0x340] sm:$0xff]  ;;  %v81_v63 = vld [vmem:[#allocation5 + $0x48] sm:$0xff] }
  0x47   :  { %414 = vmatpush.msrb.mxu3 %v201_v3  ;;  %355 = vmatpush.msrb.mxu0 %v98_v50  ;;  %v177_v3 = vld [vmem:[#allocation5 + $0x348] sm:$0xff]  ;;  %v74_v50 = vld [vmem:[#allocation5 + $0x10] sm:$0xff] }
  0x48   :  { %375 = vmatpush.msrb.mxu1 %v194_v54  ;;  %395 = vmatpush.msrb.mxu2 %v99_v49  ;;  %v170_v54 = vld [vmem:[#allocation5 + $0x310] sm:$0xff]  ;;  %v75_v49 = vld [vmem:[#allocation5 + $0x18] sm:$0xff] }
  0x49   :  { %415 = vmatpush.msrb.mxu3 %v195_v55  ;;  %356 = vmatpush.msrb.mxu0 %v92_v56  ;;  %v171_v55 = vld [vmem:[#allocation5 + $0x318] sm:$0xff] }
  0x4a   :  { %376 = vmatpush.msrb.mxu1 %v188_v57  ;;  %396 = vmatpush.msrb.mxu2 %v93_v53 }
  0x4b   :  { %416 = vmatpush.msrb.mxu3 %v189_v58  ;;  %357 = vmatpush.msrb.mxu0 %v86_v59 }
  0x4c   :  { %377 = vmatpush.msrb.mxu1 %v182_v60  ;;  %397 = vmatpush.msrb.mxu2 %v87_v52  ;;  %v166_v52 = vld [vmem:[#allocation5 + $0x2f0] sm:$0xff] }
  0x4d   :  { %417 = vmatpush.msrb.mxu3 %v183_v61  ;;  %358 = vmatpush.msrb.mxu0 %v80_v51  ;;  %v262_v61 = vld [vmem:[#allocation5 + $0x5f0] sm:$0xff] }
  0x4e   :  { %378 = vmatpush.msrb.mxu1 %v176_v62  ;;  %398 = vmatpush.msrb.mxu2 %v81_v63  ;;  %v167_v62 = vld [vmem:[#allocation5 + $0x2f8] sm:$0xff] }
  0x4f   :  { %418 = vmatpush.msrb.mxu3 %v177_v3  ;;  %359 = vmatpush.msrb.mxu0 %v74_v50  ;;  %v263_v63 = vld [vmem:[#allocation5 + $0x5f8] sm:$0xff]  ;;  %v160_v3 = vld [vmem:[#allocation5 + $0x2c0] sm:$0xff] }
  0x50   :  { %379 = vmatpush.msrb.mxu1 %v170_v54  ;;  %399 = vmatpush.msrb.mxu2 %v75_v49  ;;  %v256_v50 = vld [vmem:[#allocation5 + $0x5c0] sm:$0xff]  ;;  %v161_v54 = vld [vmem:[#allocation5 + $0x2c8] sm:$0xff] }
  0x51   :  { %419 = vmatpush.msrb.mxu3 %v171_v55  ;;  %v257_v49 = vld [vmem:[#allocation5 + $0x5c8] sm:$0xff]  ;;  %v154_v55 = vld [vmem:[#allocation5 + $0x290] sm:$0xff] }
  0x85   :  { %v65_v56 = vpop.xlane.xlu0 %64 }
  0x86   :  { %v66_v57 = vsub.f32 %v941_v0, %v65_v56  ;;  %v67_v53 = vsub.f32 %v943_v1, %v65_v56  ;;  %v250_v56 = vld [vmem:[#allocation5 + $0x590] sm:$0xff]  ;;  %v149_v1 = vld [vmem:[#allocation5 + $0x268] sm:$0xff] }
  0x87   :  { %v245_v0 = vld [vmem:[#allocation5 + $0x568] sm:$0xff] }
  0x88   :  { %v68_v58 = vmul.f32 1.442695, %v66_v57  ;;  %v70_v59 = vmul.f32 1.442695, %v67_v53  ;;  %v155_v57 = vld [vmem:[#allocation5 + $0x298] sm:$0xff] }
  0x89   :  { %v251_v53 = vld [vmem:[#allocation5 + $0x598] sm:$0xff] }
  0x8a   :  { %764 = vpow2.f32 %v68_v58  ;;  %v148_v58 = vld [vmem:[#allocation5 + $0x260] sm:$0xff] }
  0x8b   :  { %766 = vpow2.f32 %v70_v59  ;;  %v244_v59 = vld [vmem:[#allocation5 + $0x560] sm:$0xff] }
  0x90   :  { %v1141_v60 = vpop.eup %764 }
  0x91   :  { %v1143_v51 = vpop.eup %766  ;;  %280 = vmatmul.f32.vlgmr.msra.gmra.mxu0 %v1141_v60  ;;  %320 = vmatmul.f32.vlgmr.msra.gmra.mxu2 %v1141_v60 }
  0x92   :  { %300 = vmatmul.f32.vlgmr.msra.gmra.mxu1 %v1143_v51  ;;  %340 = vmatmul.f32.vlgmr.msra.gmra.mxu3 %v1143_v51 }
  0x93   :  { %424 = vmatpush.msra.mxu0 %v166_v52  ;;  %444 = vmatpush.msra.mxu1 %v262_v61  ;;  %v142_v52 = vld [vmem:[#allocation5 + $0x230] sm:$0xff] }
  0x94   :  { %464 = vmatpush.msra.mxu2 %v167_v62  ;;  %484 = vmatpush.msra.mxu3 %v263_v63  ;;  %v238_v61 = vld [vmem:[#allocation5 + $0x530] sm:$0xff]  ;;  %v143_v62 = vld [vmem:[#allocation5 + $0x238] sm:$0xff] }
  0x95   :  { %425 = vmatpush.msra.mxu0 %v160_v3  ;;  %445 = vmatpush.msra.mxu1 %v256_v50  ;;  %v239_v63 = vld [vmem:[#allocation5 + $0x538] sm:$0xff]  ;;  %v136_v3 = vld [vmem:[#allocation5 + $0x200] sm:$0xff] }
  0x96   :  { %465 = vmatpush.msra.mxu2 %v161_v54  ;;  %485 = vmatpush.msra.mxu3 %v257_v49  ;;  %v232_v50 = vld [vmem:[#allocation5 + $0x500] sm:$0xff]  ;;  %v137_v54 = vld [vmem:[#allocation5 + $0x208] sm:$0xff] }
  0x97   :  { %426 = vmatpush.msra.mxu0 %v154_v55  ;;  %446 = vmatpush.msra.mxu1 %v250_v56  ;;  %v233_v49 = vld [vmem:[#allocation5 + $0x508] sm:$0xff]  ;;  %v131_v55 = vld [vmem:[#allocation5 + $0x1d8] sm:$0xff] }
  0x98   :  { %466 = vmatpush.msra.mxu2 %v155_v57  ;;  %486 = vmatpush.msra.mxu3 %v251_v53  ;;  %v227_v56 = vld [vmem:[#allocation5 + $0x4d8] sm:$0xff]  ;;  %v124_v57 = vld [vmem:[#allocation5 + $0x1a0] sm:$0xff] }
  0x99   :  { %427 = vmatpush.msra.mxu0 %v148_v58  ;;  %447 = vmatpush.msra.mxu1 %v244_v59  ;;  %v220_v53 = vld [vmem:[#allocation5 + $0x4a0] sm:$0xff]  ;;  %v125_v58 = vld [vmem:[#allocation5 + $0x1a8] sm:$0xff] }
  0x9a   :  { %467 = vmatpush.msra.mxu2 %v149_v1  ;;  %487 = vmatpush.msra.mxu3 %v245_v0  ;;  %v130_v0 = vld [vmem:[#allocation5 + $0x1d0] sm:$0xff]  ;;  %v221_v59 = vld [vmem:[#allocation5 + $0x4a8] sm:$0xff] }
  0x9b   :  { %360 = vmatmul.f32.vlgmr.msrb.gmra.mxu0 %v1141_v60  ;;  %380 = vmatmul.f32.vlgmr.msrb.gmra.mxu1 %v1143_v51  ;;  %v226_v1 = vld [vmem:[#allocation5 + $0x4d0] sm:$0xff] }
  0x9c   :  { %400 = vmatmul.f32.vlgmr.msrb.gmra.mxu2 %v1141_v60  ;;  %420 = vmatmul.f32.vlgmr.msrb.gmra.mxu3 %v1143_v51 }
  0x9d   :  { %428 = vmatpush.msra.mxu0 %v142_v52  ;;  %448 = vmatpush.msra.mxu1 %v238_v61  ;;  %v118_v52 = vld [vmem:[#allocation5 + $0x170] sm:$0xff] }
  0x9e   :  { %468 = vmatpush.msra.mxu2 %v143_v62  ;;  %488 = vmatpush.msra.mxu3 %v239_v63  ;;  %v214_v61 = vld [vmem:[#allocation5 + $0x470] sm:$0xff]  ;;  %v119_v62 = vld [vmem:[#allocation5 + $0x178] sm:$0xff] }
  0x9f   :  { %429 = vmatpush.msra.mxu0 %v136_v3  ;;  %449 = vmatpush.msra.mxu1 %v232_v50  ;;  %v215_v63 = vld [vmem:[#allocation5 + $0x478] sm:$0xff]  ;;  %v112_v3 = vld [vmem:[#allocation5 + $0x140] sm:$0xff] }
  0xa0   :  { %469 = vmatpush.msra.mxu2 %v137_v54  ;;  %489 = vmatpush.msra.mxu3 %v233_v49  ;;  %v208_v50 = vld [vmem:[#allocation5 + $0x440] sm:$0xff]  ;;  %v113_v54 = vld [vmem:[#allocation5 + $0x148] sm:$0xff] }
  0xa1   :  { %430 = vmatpush.msra.mxu0 %v130_v0  ;;  %450 = vmatpush.msra.mxu1 %v226_v1  ;;  %v209_v49 = vld [vmem:[#allocation5 + $0x448] sm:$0xff]  ;;  %v106_v0 = vld [vmem:[#allocation5 + $0x110] sm:$0xff] }
  0xa2   :  { %470 = vmatpush.msra.mxu2 %v131_v55  ;;  %490 = vmatpush.msra.mxu3 %v227_v56  ;;  %v202_v1 = vld [vmem:[#allocation5 + $0x410] sm:$0xff]  ;;  %v107_v55 = vld [vmem:[#allocation5 + $0x118] sm:$0xff] }
  0xa3   :  { %431 = vmatpush.msra.mxu0 %v124_v57  ;;  %451 = vmatpush.msra.mxu1 %v220_v53  ;;  %v203_v56 = vld [vmem:[#allocation5 + $0x418] sm:$0xff]  ;;  %v100_v57 = vld [vmem:[#allocation5 + $0xe0] sm:$0xff] }
  0xa4   :  { %471 = vmatpush.msra.mxu2 %v125_v58  ;;  %491 = vmatpush.msra.mxu3 %v221_v59  ;;  %v196_v53 = vld [vmem:[#allocation5 + $0x3e0] sm:$0xff]  ;;  %v101_v58 = vld [vmem:[#allocation5 + $0xe8] sm:$0xff] }
  0xa5   :  { %432 = vmatpush.msra.mxu0 %v118_v52  ;;  %452 = vmatpush.msra.mxu1 %v214_v61  ;;  %v197_v59 = vld [vmem:[#allocation5 + $0x3e8] sm:$0xff]  ;;  %v94_v52 = vld [vmem:[#allocation5 + $0xb0] sm:$0xff] }
  0xa6   :  { %472 = vmatpush.msra.mxu2 %v119_v62  ;;  %492 = vmatpush.msra.mxu3 %v215_v63  ;;  %v190_v61 = vld [vmem:[#allocation5 + $0x3b0] sm:$0xff]  ;;  %v95_v62 = vld [vmem:[#allocation5 + $0xb8] sm:$0xff] }
  0xa7   :  { %433 = vmatpush.msra.mxu0 %v112_v3  ;;  %453 = vmatpush.msra.mxu1 %v208_v50  ;;  %v191_v63 = vld [vmem:[#allocation5 + $0x3b8] sm:$0xff]  ;;  %v88_v3 = vld [vmem:[#allocation5 + $0x80] sm:$0xff] }
  0xa8   :  { %473 = vmatpush.msra.mxu2 %v113_v54  ;;  %493 = vmatpush.msra.mxu3 %v209_v49  ;;  %v184_v50 = vld [vmem:[#allocation5 + $0x380] sm:$0xff]  ;;  %v89_v54 = vld [vmem:[#allocation5 + $0x88] sm:$0xff] }
  0xa9   :  { %434 = vmatpush.msra.mxu0 %v106_v0  ;;  %454 = vmatpush.msra.mxu1 %v202_v1  ;;  %v185_v49 = vld [vmem:[#allocation5 + $0x388] sm:$0xff]  ;;  %v82_v0 = vld [vmem:[#allocation5 + $0x50] sm:$0xff] }
  0xaa   :  { %474 = vmatpush.msra.mxu2 %v107_v55  ;;  %494 = vmatpush.msra.mxu3 %v203_v56  ;;  %v178_v1 = vld [vmem:[#allocation5 + $0x350] sm:$0xff]  ;;  %v83_v55 = vld [vmem:[#allocation5 + $0x58] sm:$0xff] }
  0xab   :  { %435 = vmatpush.msra.mxu0 %v100_v57  ;;  %455 = vmatpush.msra.mxu1 %v196_v53  ;;  %v179_v56 = vld [vmem:[#allocation5 + $0x358] sm:$0xff]  ;;  %v76_v57 = vld [vmem:[#allocation5 + $0x20] sm:$0xff] }
  0xac   :  { %475 = vmatpush.msra.mxu2 %v101_v58  ;;  %495 = vmatpush.msra.mxu3 %v197_v59  ;;  %v172_v53 = vld [vmem:[#allocation5 + $0x320] sm:$0xff]  ;;  %v77_v58 = vld [vmem:[#allocation5 + $0x28] sm:$0xff] }
  0xad   :  { %436 = vmatpush.msra.mxu0 %v94_v52  ;;  %456 = vmatpush.msra.mxu1 %v190_v61  ;;  %v173_v59 = vld [vmem:[#allocation5 + $0x328] sm:$0xff] }
  0xae   :  { %476 = vmatpush.msra.mxu2 %v95_v62  ;;  %496 = vmatpush.msra.mxu3 %v191_v63 }
  0xaf   :  { %437 = vmatpush.msra.mxu0 %v88_v3  ;;  %457 = vmatpush.msra.mxu1 %v184_v50 }
  0xb0   :  { %477 = vmatpush.msra.mxu2 %v89_v54  ;;  %497 = vmatpush.msra.mxu3 %v185_v49 }
  0xb1   :  { %438 = vmatpush.msra.mxu0 %v82_v0  ;;  %458 = vmatpush.msra.mxu1 %v178_v1 }
  0xb2   :  { %478 = vmatpush.msra.mxu2 %v83_v55  ;;  %498 = vmatpush.msra.mxu3 %v179_v56 }
  0xb3   :  { %439 = vmatpush.msra.mxu0 %v76_v57  ;;  %459 = vmatpush.msra.mxu1 %v172_v53 }
  0xb4   :  { %479 = vmatpush.msra.mxu2 %v77_v58  ;;  %499 = vmatpush.msra.mxu3 %v173_v59 }
  0xb5   :  { %440 = vmatmul.f32.vlgmr.msra.gmra.mxu0 %v1141_v60  ;;  %460 = vmatmul.f32.vlgmr.msra.gmra.mxu1 %v1143_v51 }
  0xb6   :  { %480 = vmatmul.f32.vlgmr.msra.gmra.mxu2 %v1141_v60  ;;  %500 = vmatmul.f32.vlgmr.msra.gmra.mxu3 %v1143_v51 }
  0xb7   :  { %570 = vmatpush.msrb.mxu0 %v945_v2  ;;  %590 = vmatpush.msrb.mxu1 %v950_v4  ;;  %v1288_v2 = vld [vmem:[#allocation17_spill] sm:$0xff]  ;;  %v1289_v4 = vld [vmem:[#allocation18_spill] sm:$0xff] }
  0xb8   :  { %610 = vmatpush.msrb.mxu2 %v952_v5  ;;  %630 = vmatpush.msrb.mxu3 %v954_v6  ;;  %v1290_v5 = vld [vmem:[#allocation19_spill] sm:$0xff]  ;;  %v1291_v6 = vld [vmem:[#allocation20_spill] sm:$0xff] }
  0xb9   :  { %571 = vmatpush.msrb.mxu0 %v958_v7  ;;  %591 = vmatpush.msrb.mxu1 %v960_v8  ;;  %v1292_v7 = vld [vmem:[#allocation21_spill] sm:$0xff]  ;;  %v1293_v8 = vld [vmem:[#allocation22_spill] sm:$0xff] }
  0xba   :  { %611 = vmatpush.msrb.mxu2 %v962_v9  ;;  %631 = vmatpush.msrb.mxu3 %v965_v10  ;;  %v1294_v9 = vld [vmem:[#allocation23_spill] sm:$0xff]  ;;  %v1295_v10 = vld [vmem:[#allocation24_spill] sm:$0xff] }
  0xbb   :  { %572 = vmatpush.msrb.mxu0 %v967_v11  ;;  %592 = vmatpush.msrb.mxu1 %v969_v12  ;;  %v1296_v11 = vld [vmem:[#allocation25_spill] sm:$0xff]  ;;  %v1297_v12 = vld [vmem:[#allocation26_spill] sm:$0xff] }
  0xbc   :  { %612 = vmatpush.msrb.mxu2 %v973_v13  ;;  %632 = vmatpush.msrb.mxu3 %v975_v14  ;;  %v1298_v13 = vld [vmem:[#allocation27_spill] sm:$0xff]  ;;  %v1299_v14 = vld [vmem:[#allocation28_spill] sm:$0xff] }
  0xbd   :  { %573 = vmatpush.msrb.mxu0 %v979_v15  ;;  %593 = vmatpush.msrb.mxu1 %v981_v16  ;;  %v1300_v15 = vld [vmem:[#allocation29_spill] sm:$0xff]  ;;  %v1301_v16 = vld [vmem:[#allocation30_spill] sm:$0xff] }
  0xbe   :  { %613 = vmatpush.msrb.mxu2 %v985_v17  ;;  %633 = vmatpush.msrb.mxu3 %v987_v18  ;;  %v1302_v17 = vld [vmem:[#allocation31_spill] sm:$0xff]  ;;  %v1303_v18 = vld [vmem:[#allocation32_spill] sm:$0xff] }
  0xbf   :  { %574 = vmatpush.msrb.mxu0 %v991_v19  ;;  %594 = vmatpush.msrb.mxu1 %v993_v20  ;;  %v1304_v19 = vld [vmem:[#allocation15_spill] sm:$0xff] }
  0xc0   :  { %614 = vmatpush.msrb.mxu2 %v997_v21  ;;  %634 = vmatpush.msrb.mxu3 %v999_v22  ;;  %v504_v20 = vmul.f32 %v1141_v60, %v1304_v19  ;;  %v1305_v21 = vld [vmem:[#allocation16_spill] sm:$0xff] }
  0xc1   :  { %575 = vmatpush.msrb.mxu0 %v1003_v23  ;;  %595 = vmatpush.msrb.mxu1 %v1005_v24  ;;  %v505_v22 = vmul.f32 %v1143_v51, %v1305_v21  ;;  %v1306_v23 = vld [vmem:[#allocation33_spill] sm:$0xff]  ;;  %v1307_v24 = vld [vmem:[#allocation34_spill] sm:$0xff] }
  0xc2   :  { %615 = vmatpush.msrb.mxu2 %v1009_v25  ;;  %635 = vmatpush.msrb.mxu3 %v1011_v26 }
  0xc3   :  { %576 = vmatpush.msrb.mxu0 %v1015_v27  ;;  %596 = vmatpush.msrb.mxu1 %v1017_v28 }
  0xc4   :  { %616 = vmatpush.msrb.mxu2 %v1021_v29  ;;  %636 = vmatpush.msrb.mxu3 %v1023_v30 }
  0xc5   :  { %577 = vmatpush.msrb.mxu0 %v1027_v31  ;;  %597 = vmatpush.msrb.mxu1 %v1029_v32  ;;  %v1225_v32 = vld [vmem:[#allocation7] ss:$2 sm:$0xf] }
  0xc6   :  { %617 = vmatpush.msrb.mxu2 %v1033_v33  ;;  %637 = vmatpush.msrb.mxu3 %v1035_v34  ;;  %v661_v62 = vperm.slane %v1225_v32, 1 }
  0xc7   :  { %578 = vmatpush.msrb.mxu0 %v1039_v35  ;;  %598 = vmatpush.msrb.mxu1 %v1041_v36  ;;  %v1227_v36 = vld [vmem:[#allocation7 + $0x1] ss:$2 sm:$0xf] }
  0xc8   :  { %618 = vmatpush.msrb.mxu2 %v1045_v37  ;;  %638 = vmatpush.msrb.mxu3 %v1047_v38  ;;  %v660_v38 = vperm.slane %v1225_v32, 0  ;;  %v676_v54 = vperm.slane %v1227_v36, 1 }
  0xc9   :  { %579 = vmatpush.msrb.mxu0 %v1051_v39  ;;  %599 = vmatpush.msrb.mxu1 %v1053_v40 }
  0xca   :  { %619 = vmatpush.msrb.mxu2 %v1057_v41  ;;  %639 = vmatpush.msrb.mxu3 %v1059_v42  ;;  %v675_v42 = vperm.slane %v1227_v36, 0 }
  0xcb   :  { %580 = vmatpush.msrb.mxu0 %v1063_v43  ;;  %600 = vmatpush.msrb.mxu1 %v1065_v44 }
  0xcc   :  { %620 = vmatpush.msrb.mxu2 %v1069_v45  ;;  %640 = vmatpush.msrb.mxu3 %v1071_v46 }
  0xcd   :  { %581 = vmatpush.msrb.mxu0 %v1075_v47  ;;  %601 = vmatpush.msrb.mxu1 %v1077_v48 }
  0xce   :  { %621 = vmatpush.msrb.mxu2 %v1288_v2  ;;  %641 = vmatpush.msrb.mxu3 %v1289_v4 }
  0xcf   :  { %582 = vmatpush.msrb.mxu0 %v1290_v5  ;;  %602 = vmatpush.msrb.mxu1 %v1291_v6 }
  0xd0   :  { %622 = vmatpush.msrb.mxu2 %v1292_v7  ;;  %642 = vmatpush.msrb.mxu3 %v1293_v8 }
  0xd1   :  { %583 = vmatpush.msrb.mxu0 %v1294_v9  ;;  %603 = vmatpush.msrb.mxu1 %v1295_v10  ;;  %v662_v10 = vperm.slane %v1225_v32, 2 }
  0xd2   :  { %623 = vmatpush.msrb.mxu2 %v1296_v11  ;;  %643 = vmatpush.msrb.mxu3 %v1297_v12  ;;  %v677_v12 = vperm.slane %v1227_v36, 2 }
  0xd3   :  { %584 = vmatpush.msrb.mxu0 %v1298_v13  ;;  %604 = vmatpush.msrb.mxu1 %v1299_v14 }
  0xd4   :  { %624 = vmatpush.msrb.mxu2 %v1300_v15  ;;  %644 = vmatpush.msrb.mxu3 %v1301_v16 }
  0xd5   :  { %585 = vmatpush.msrb.mxu0 %v1302_v17  ;;  %605 = vmatpush.msrb.mxu1 %v1303_v18  ;;  %v663_v18 = vperm.slane %v1225_v32, 3 }
  0xd6   :  { %625 = vmatpush.msrb.mxu2 %v1306_v23  ;;  %645 = vmatpush.msrb.mxu3 %v1307_v24 }
  0xd7   :  { %586 = vmatmul.f32.vlgmr.msrb.gmra.mxu0 %v504_v20  ;;  %606 = vmatmul.f32.vlgmr.msrb.gmra.mxu1 %v505_v22 }
  0xd8   :  { %626 = vmatmul.f32.vlgmr.msrb.gmra.mxu2 %v504_v20  ;;  %646 = vmatmul.f32.vlgmr.msrb.gmra.mxu3 %v505_v22  ;;  %v678_v20 = vperm.slane %v1227_v36, 3 }
 0x10e   :  { %v281_v25 = vpop.f32.mrf.mxu0 }
 0x10f   :  { %v301_v26 = vpop.f32.mrf.mxu1 }
 0x110   :  { %v302_v27 = vadd.f32 %v301_v26, %v281_v25 }
 0x112   :  { %v650_v28 = vadd.f32 1e-08, %v302_v27 }
 0x114   :  { %768 = vrcp.f32 %v650_v28  ;;  %v321_v29 = vpop.f32.mrf.mxu2  ;;  %v702_v45 = vand.u32 2147483648, %v650_v28  ;;  %v700_v51 = vand.u32 2147483647, %v650_v28  ;;  %vm696_vm1 = vweird.f32 %v650_v28 }
 0x115   :  { %v341_v30 = vpop.f32.mrf.mxu3 }
 0x116   :  { %v342_v31 = vadd.f32 %v341_v30, %v321_v29  ;;  %v703_v49 = vor.u32 1.1754944e-38, %v702_v45  ;;  %vm701_vm3 = vcmp.eq.f32.partialorder %v700_v51, 8.507059e+37 }
 0x118   :  { %v651_v33 = vadd.f32 1e-08, %v342_v31  ;;  %v361_v34 = vpop.f32.mrf.mxu0  ;;  %v381_v35 = vpop.f32.mrf.mxu1 }
 0x119   :  { %v382_v37 = vadd.f32 %v381_v35, %v361_v34 }
 0x11a   :  { %v769_v39 = vpop.eup %768  ;;  %770 = vrcp.f32 %v651_v33  ;;  %v717_v57 = vand.u32 2147483648, %v651_v33  ;;  %v715_v58 = vand.u32 2147483647, %v651_v33  ;;  %vm711_vm5 = vweird.f32 %v651_v33 }
 0x11b   :  { %v692_v40 = vmul.f32 %v769_v39, %v650_v28  ;;  %v654_v41 = vmul.f32 %v769_v39, %v382_v37  ;;  %vm697_vm0 = vweird.f32 %v769_v39 }
 0x11c   :  { %vm698_vm2 = vmor %vm696_vm1, %vm697_vm0  ;;  %v718_v4 = vor.u32 1.1754944e-38, %v717_v57  ;;  %vm716_vm7 = vcmp.eq.f32.partialorder %v715_v58, 8.507059e+37 }
 0x11d   :  { %v693_v43 = vsub.f32 1.0, %v692_v40  ;;  %v668_v44 = vmul.f32 %v660_v38, %v654_v41 }
 0x11f   :  { %v683_v46 = vadd.f32 %v675_v42, %v668_v44  ;;  %v401_v47 = vpop.f32.mrf.mxu2  ;;  %v421_v48 = vpop.f32.mrf.mxu3  ;;  %v694_v60 = vmul.f32 %v769_v39, %v693_v43 }
 0x120   :  { %v771_v52 = vpop.eup %770  ;;  %v422_v61 = vadd.f32 %v421_v48, %v401_v47 }
 0x121   :  { %v707_v63 = vmul.f32 %v771_v52, %v651_v33  ;;  %687 = vst [vmem:[#allocation8] sm:$0xff] %v683_v46  ;;  %v695_v3 = vadd.f32 %v769_v39, %v694_v60  ;;  %vm712_vm4 = vweird.f32 %v771_v52 }
 0x122   :  { %v655_v50 = vmul.f32 %v771_v52, %v422_v61  ;;  %vm713_vm6 = vmor %vm711_vm5, %vm712_vm4 }
 0x123   :  { %v708_v0 = vsub.f32 1.0, %v707_v63  ;;  %v699_v1 = vsel %vm698_vm2, %v769_v39, %v695_v3 }
 0x124   :  { %v669_v55 = vmul.f32 %v661_v62, %v655_v50  ;;  %v704_v56 = vsel %vm701_vm3, %v703_v49, %v699_v1 }
 0x125   :  { %v709_v53 = vmul.f32 %v771_v52, %v708_v0 }
 0x126   :  { %v684_v59 = vadd.f32 %v676_v54, %v669_v55 }
 0x127   :  { %v710_v2 = vadd.f32 %v771_v52, %v709_v53 }
 0x128   :  { %688 = vst [vmem:[#allocation8 + $0x8] sm:$0xff] %v684_v59 }
 0x129   :  { %v714_v5 = vsel %vm713_vm6, %v771_v52, %v710_v2 }
 0x12a   :  { %v719_v6 = vsel %vm716_vm7, %v718_v4, %v714_v5 }
 0x132   :  { %v441_v7 = vpop.f32.mrf.mxu0  ;;  %v461_v8 = vpop.f32.mrf.mxu1 }
 0x133   :  { %v462_v9 = vadd.f32 %v461_v8, %v441_v7 }
 0x135   :  { %v656_v11 = vmul.f32 %v769_v39, %v462_v9 }
 0x137   :  { %v670_v13 = vmul.f32 %v662_v10, %v656_v11 }
 0x139   :  { %v685_v14 = vadd.f32 %v677_v12, %v670_v13  ;;  %v481_v15 = vpop.f32.mrf.mxu2  ;;  %v501_v16 = vpop.f32.mrf.mxu3 }
 0x13a   :  { %v502_v17 = vadd.f32 %v501_v16, %v481_v15 }
 0x13b   :  { %689 = vst [vmem:[#allocation8 + $0x10] sm:$0xff] %v685_v14 }
 0x13c   :  { %v657_v19 = vmul.f32 %v771_v52, %v502_v17 }
 0x13e   :  { %v671_v21 = vmul.f32 %v663_v18, %v657_v19 }
 0x140   :  { %v686_v22 = vadd.f32 %v678_v20, %v671_v21 }
 0x142   :  { %690 = vst [vmem:[#allocation8 + $0x18] sm:$0xff] %v686_v22 }
 0x143   :  { %733 = dma.vmem_to_hbm [thread:$0]  %s729_s2, 512, %s731_s7, [#allocation4]  }
 0x154   :  { %v587_v23 = vpop.f32.mrf.mxu0  ;;  %v607_v24 = vpop.f32.mrf.mxu1 }
 0x155   :  { %v608_v25 = vadd.f32 %v607_v24, %v587_v23 }
 0x157   :  { %v705_v26 = vmul.f32 %v704_v56, %v608_v25 }
 0x159   :  { %721 = vst [vmem:[#allocation9] sm:$0xff] %v705_v26 }
 0x15b   :  { %v627_v27 = vpop.f32.mrf.mxu2  ;;  %v647_v28 = vpop.f32.mrf.mxu3 }
 0x15c   :  { %v648_v29 = vadd.f32 %v647_v28, %v627_v27 }
 0x15e   :  { %v720_v30 = vmul.f32 %v719_v6, %v648_v29 }
 0x160   :  { %722 = vst [vmem:[#allocation9 + $0x8] sm:$0xff] %v720_v30 }
 0x161   :  { %744 = dma.vmem_to_hbm [thread:$0]  %s740_s9, 256, %s742_s12, [#allocation10]  }
 0x162   :  { %896 = dma.done.wait [#allocation4], 512  }
 0x163   :  { %897 = vsyncadd [#allocation4], 4294966784 }
 0x164   :  { %898 = dma.done.wait [#allocation10], 256  }
 0x165   :  { %899 = vsyncadd [#allocation10], 4294967040 }
 0x166   :  { %753 = vsyncpa [#allocation3], 1 }
 0x167   :  { %754 = vsyncpa [#allocation6], 1 }
 0x168   :  { %755 = vsyncpa [#allocation4], 1 }
 0x169   :  { %756 = vsyncpa [#allocation10], 1 }

</bundles_post_ra>
